<compile_context>
chip_gen: v5e
topology: v5e:2x2
jax: 0.10.0
libtpu: 0.0.40
codegen_flags: <defaults>
</compile_context>

<pallas_src>
import functools

import numpy as np
import jax
import jax.numpy as jnp
from jax import lax
from jax.experimental import pallas as pl
from jax.experimental.pallas import tpu as pltpu


def basic_block_kernel(x_ref, w_ref, sb_ref, out_ref, *, H):
    # x_ref  : (B*H, WC)      bf16  lane-dense activations, B images stacked
    # w_ref  : (2, 3*WC, WC)  bf16  K-fused block-banded weights (conv1, conv2)
    # sb_ref : (4, WC)        f32   folded BN vectors: s1, b1, s2, b2
    # out_ref: (B*H, WC)      f32
    M, WC = out_ref.shape
    B = M // H

    # Per-image row index -> masks implementing 'SAME' zero padding along H.
    row_in_img = lax.broadcasted_iota(jnp.int32, (B, H, WC), 1).reshape(M, WC)
    first_row = row_in_img == 0
    last_row = row_in_img == H - 1
    zero_row = jnp.zeros((1, WC), jnp.float32)

    sb = sb_ref[...]
    s1, b1, s2, b2 = sb[0:1], sb[1:2], sb[2:3], sb[3:4]

    def conv3x3(x, w):
        # K-fused LHS: lanes [0:WC)=x[h-1], [WC:2WC)=x[h], [2WC:3WC)=x[h+1],
        # with per-image zero halo rows.  One MXU matmul, K = 3*WC.
        x_dn = jnp.where(first_row, 0.0,
                         jnp.concatenate([zero_row, x[:-1, :]], axis=0))
        x_up = jnp.where(last_row, 0.0,
                         jnp.concatenate([x[1:, :], zero_row], axis=0))
        lhs = jnp.concatenate([x_dn, x, x_up], axis=-1).astype(jnp.bfloat16)
        return jnp.dot(lhs, w, preferred_element_type=jnp.float32)

    # Single f32 upcast of the block; reused for the identity/residual path.
    x = x_ref[...].astype(jnp.float32)

    # conv1 + bn1 (folded) + relu
    y1 = jnp.maximum(conv3x3(x, w_ref[0]) * s1 + b1, 0.0)
    # conv2 + bn2 (folded) + residual add + relu
    y2 = conv3x3(y1, w_ref[1]) * s2 + b2 + x
    out_ref[...] = jnp.maximum(y2, 0.0).astype(out_ref.dtype)


def build_banded_weights(w_hwio, W):
    """(3, 3, Cin, Cout) HWIO conv weights -> (3*W*Cin, W*Cout) K-fused
    block-banded matrix.  Column (kx) taps falling outside [0, W) get no band
    entry, which is exactly 'SAME' zero padding along W; the 3 row (ky) taps
    are stacked along K to match the [x(h-1) | x(h) | x(h+1)] lane-concatenated
    LHS built inside the kernel."""
    kh, kw, Cin, Cout = w_hwio.shape
    pad = kw // 2
    wi = np.arange(W)[:, None]
    wo = np.arange(W)[None, :]
    band = np.stack([(wi == wo + kx - pad).astype(np.float32)
                     for kx in range(kw)], axis=0)              # (kw, W, W)
    # wb[ky, wi, ci, wo, co] = sum_kx band[kx, wi, wo] * w[ky, kx, ci, co]
    wb = jnp.einsum('xio,yxcd->yicod', jnp.asarray(band), w_hwio)
    return wb.reshape(kh * W * Cin, W * Cout)


def basic_block(x_nhwc, w1, s1, b1, w2, s2, b2, *, images_per_step=None):
    """x_nhwc: (N, H, W, C) f32; w*: (3,3,C,C) HWIO; s*/b*: (C,) folded BN."""
    N, H, W, C = x_nhwc.shape
    assert w1.shape[2] == C and w1.shape[3] == C, \
        "residual add requires inplanes == planes (no downsample)"
    WC = W * C

    if images_per_step is None:
        # Keep >= 2 grid steps so both v7x TensorCores get work; with H = 16
        # this also gives M = B*H >= 128 rows per MXU matmul for N >= 16.
        # (On single-TC v5e/v6e, B = N / one step would minimize overhead.)
        images_per_step = N // 2 if (N >= 2 and N % 2 == 0) else N
    B = images_per_step
    assert N % B == 0, "batch must be divisible by images_per_step"

    # Lane-dense layout + bf16 HBM activations / MXU operands.
    x2d = x_nhwc.reshape(N * H, WC).astype(jnp.bfloat16)

    # Merged constant operands: 2 K-fused banded weight mats + 4 BN vectors.
    w_packed = jnp.stack([build_banded_weights(w1, W),
                          build_banded_weights(w2, W)]).astype(jnp.bfloat16)
    sb_packed = jnp.stack([jnp.tile(s1, W), jnp.tile(b1, W),
                           jnp.tile(s2, W), jnp.tile(b2, W)]).astype(jnp.float32)

    out2d = pl.pallas_call(
        functools.partial(basic_block_kernel, H=H),
        out_shape=jax.ShapeDtypeStruct((N * H, WC), jnp.float32),
        grid=(N // B,),
        in_specs=[
            pl.BlockSpec((B * H, WC), lambda n: (n, 0)),
            pl.BlockSpec((2, 3 * WC, WC), lambda n: (0, 0, 0)),
            pl.BlockSpec((4, WC), lambda n: (0, 0)),
        ],
        out_specs=pl.BlockSpec((B * H, WC), lambda n: (n, 0)),
        compiler_params=pltpu.CompilerParams(
            dimension_semantics=("parallel",),
            vmem_limit_bytes=32 * 1024 * 1024),
    )(x2d, w_packed, sb_packed)
    return out2d.reshape(N, H, W, C)


def reference_block(x_nhwc, w1, s1, b1, w2, s2, b2):
    """Plain-JAX f32 reference (same math, lax.conv)."""
    dn = ('NHWC', 'HWIO', 'NHWC')
    s1 = s1.reshape(1, 1, 1, -1); b1 = b1.reshape(1, 1, 1, -1)
    s2 = s2.reshape(1, 1, 1, -1); b2 = b2.reshape(1, 1, 1, -1)
    y = lax.conv_general_dilated(x_nhwc, w1, (1, 1), 'SAME', dimension_numbers=dn)
    y = jnp.maximum(y * s1 + b1, 0.0)
    y = lax.conv_general_dilated(y, w2, (1, 1), 'SAME', dimension_numbers=dn)
    y = y * s2 + b2 + x_nhwc
    return jnp.maximum(y, 0.0)


def fold_bn(gamma, beta, running_mean, running_var, eps=1e-5):
    scale = gamma / jnp.sqrt(running_var + eps)
    bias = beta - running_mean * scale
    return scale, bias


if __name__ == "__main__":
    # BasicBlock(inplanes=8, planes=8, stride=1).  W*C = 16*8 = 128 keeps the
    # folded last dim exactly one lane tile wide; N=16 with 8 images per grid
    # step gives M = 128 rows per MXU matmul and a 2-step grid.
    N, C, H, W = 16, 8, 16, 16

    key = jax.random.PRNGKey(0)
    kx, kw1, kw2, kg1, kb1, kg2, kb2, km1, km2 = jax.random.split(key, 9)

    # PyTorch layout input is NCHW -> convert to NHWC for the kernel.
    x_nchw = jax.random.normal(kx, (N, C, H, W), jnp.float32)
    x_nhwc = jnp.transpose(x_nchw, (0, 2, 3, 1))

    # conv3x3 weights (no bias), stored HWIO, deterministic init.
    w1 = 0.1 * jax.random.normal(kw1, (3, 3, C, C), jnp.float32)
    w2 = 0.1 * jax.random.normal(kw2, (3, 3, C, C), jnp.float32)

    # BatchNorm params (eval mode, deterministic).
    gamma1 = 1.0 + 0.1 * jax.random.normal(kg1, (C,), jnp.float32)
    beta1 = 0.1 * jax.random.normal(kb1, (C,), jnp.float32)
    mean1 = 0.05 * jax.random.normal(km1, (C,), jnp.float32)
    var1 = jnp.abs(1.0 + 0.1 * jax.random.normal(kg1, (C,), jnp.float32))

    gamma2 = 1.0 + 0.1 * jax.random.normal(kg2, (C,), jnp.float32)
    beta2 = 0.1 * jax.random.normal(kb2, (C,), jnp.float32)
    mean2 = 0.05 * jax.random.normal(km2, (C,), jnp.float32)
    var2 = jnp.abs(1.0 + 0.1 * jax.random.normal(kg2, (C,), jnp.float32))

    s1, b1 = fold_bn(gamma1, beta1, mean1, var1)
    s2, b2 = fold_bn(gamma2, beta2, mean2, var2)

    out = basic_block(x_nhwc, w1, s1, b1, w2, s2, b2)
    out = jax.block_until_ready(out)

    ref = reference_block(x_nhwc, w1, s1, b1, w2, s2, b2)
    assert out.shape == (N, H, W, C)
    # bf16 HBM activations + bf16 MXU operands -> bf16-scale tolerance vs f32.
    assert jnp.allclose(out, ref, atol=5e-2, rtol=5e-2), "mismatch vs reference"

    print("KERNEL_OK")
</pallas_src>

<mosaic_0001>
module attributes {stable_mosaic.version = 11 : i64} {
  func.func @basic_block_kernel(%arg0: i32, %arg1: memref<128x128xbf16, #tpu.memory_space<vmem>>, %arg2: memref<2x384x128xbf16, #tpu.memory_space<vmem>>, %arg3: memref<4x128xf32, #tpu.memory_space<vmem>>, %arg4: memref<128x128xf32, #tpu.memory_space<vmem>>) attributes {dimension_semantics = [#tpu.dimension_semantics<parallel>], iteration_bounds = array<i64: 2>, scalar_prefetch = 0 : i64, scratch_operands = 0 : i64, tpu.core_type = #tpu.core_type<tc>, window_params = [{transform_indices = @transform_0, window_bounds = array<i64: 128, 128>}, {pipeline_mode = #tpu.pipeline_mode<synchronous>, transform_indices = @transform_1, window_bounds = array<i64: 2, 384, 128>}, {pipeline_mode = #tpu.pipeline_mode<synchronous>, transform_indices = @transform_2, window_bounds = array<i64: 4, 128>}, {transform_indices = @transform_3, window_bounds = array<i64: 128, 128>}]} {
    %0 = tpu.iota {dimensions = array<i32: 1>} : vector<8x16x128xi32>
    %1 = vector.shape_cast %0 : vector<8x16x128xi32> to vector<128x128xi32>
    %c0_i32 = arith.constant 0 : i32
    %2 = vector.broadcast %c0_i32 : i32 to vector<128x128xi32>
    %3 = arith.cmpi eq, %1, %2 : vector<128x128xi32>
    %c15_i32 = arith.constant 15 : i32
    %4 = vector.broadcast %c15_i32 : i32 to vector<128x128xi32>
    %5 = arith.cmpi eq, %1, %4 : vector<128x128xi32>
    %cst = arith.constant 0.000000e+00 : f32
    %6 = vector.broadcast %cst : f32 to vector<1x128xf32>
    %c0 = arith.constant 0 : index
    %c0_0 = arith.constant 0 : index
    %7 = vector.load %arg3[%c0, %c0_0] : memref<4x128xf32, #tpu.memory_space<vmem>>, vector<4x128xf32>
    %8 = vector.extract_strided_slice %7 {offsets = [0, 0], sizes = [1, 128], strides = [1, 1]} : vector<4x128xf32> to vector<1x128xf32>
    %9 = vector.extract_strided_slice %7 {offsets = [1, 0], sizes = [1, 128], strides = [1, 1]} : vector<4x128xf32> to vector<1x128xf32>
    %10 = vector.extract_strided_slice %7 {offsets = [2, 0], sizes = [1, 128], strides = [1, 1]} : vector<4x128xf32> to vector<1x128xf32>
    %11 = vector.extract_strided_slice %7 {offsets = [3, 0], sizes = [1, 128], strides = [1, 1]} : vector<4x128xf32> to vector<1x128xf32>
    %c0_1 = arith.constant 0 : index
    %c0_2 = arith.constant 0 : index
    %12 = vector.load %arg1[%c0_1, %c0_2] : memref<128x128xbf16, #tpu.memory_space<vmem>>, vector<128x128xbf16>
    %13 = arith.extf %12 : vector<128x128xbf16> to vector<128x128xf32>
    %c0_3 = arith.constant 0 : index
    %c0_4 = arith.constant 0 : index
    %c0_5 = arith.constant 0 : index
    %14 = vector.load %arg2[%c0_3, %c0_4, %c0_5] : memref<2x384x128xbf16, #tpu.memory_space<vmem>>, vector<1x384x128xbf16>
    %15 = vector.shape_cast %14 : vector<1x384x128xbf16> to vector<384x128xbf16>
    %16 = vector.extract_strided_slice %13 {offsets = [0, 0], sizes = [127, 128], strides = [1, 1]} : vector<128x128xf32> to vector<127x128xf32>
    %17 = tpu.concatenate %6, %16 in 0 : vector<1x128xf32>, vector<127x128xf32> -> vector<128x128xf32>
    %cst_6 = arith.constant 0.000000e+00 : f32
    %18 = vector.broadcast %cst_6 : f32 to vector<128x128xf32>
    %19 = arith.select %3, %18, %17 : vector<128x128xi1>, vector<128x128xf32>
    %20 = vector.extract_strided_slice %13 {offsets = [1, 0], sizes = [127, 128], strides = [1, 1]} : vector<128x128xf32> to vector<127x128xf32>
    %21 = tpu.concatenate %20, %6 in 0 : vector<127x128xf32>, vector<1x128xf32> -> vector<128x128xf32>
    %cst_7 = arith.constant 0.000000e+00 : f32
    %22 = vector.broadcast %cst_7 : f32 to vector<128x128xf32>
    %23 = arith.select %5, %22, %21 : vector<128x128xi1>, vector<128x128xf32>
    %24 = tpu.concatenate %19, %13, %23 in 1 : vector<128x128xf32>, vector<128x128xf32>, vector<128x128xf32> -> vector<128x384xf32>
    %25 = arith.truncf %24 : vector<128x384xf32> to vector<128x384xbf16>
    %cst_8 = arith.constant dense<0.000000e+00> : vector<128x128xf32>
    %26 = tpu.matmul %25, %15, %cst_8 {dimension_numbers = #tpu.dot_dimension_numbers<[1], [0], [0], [1], [0, 0, 1, 1], [], []>} : vector<128x384xbf16>, vector<384x128xbf16>, vector<128x128xf32> -> vector<128x128xf32>
    %27 = vector.broadcast %8 : vector<1x128xf32> to vector<128x128xf32>
    %28 = arith.mulf %26, %27 : vector<128x128xf32>
    %29 = vector.broadcast %9 : vector<1x128xf32> to vector<128x128xf32>
    %30 = arith.addf %28, %29 : vector<128x128xf32>
    %cst_9 = arith.constant 0.000000e+00 : f32
    %31 = vector.broadcast %cst_9 : f32 to vector<128x128xf32>
    %32 = arith.maximumf %30, %31 : vector<128x128xf32>
    %c1 = arith.constant 1 : index
    %c0_10 = arith.constant 0 : index
    %c0_11 = arith.constant 0 : index
    %33 = vector.load %arg2[%c1, %c0_10, %c0_11] : memref<2x384x128xbf16, #tpu.memory_space<vmem>>, vector<1x384x128xbf16>
    %34 = vector.shape_cast %33 : vector<1x384x128xbf16> to vector<384x128xbf16>
    %35 = vector.extract_strided_slice %32 {offsets = [0, 0], sizes = [127, 128], strides = [1, 1]} : vector<128x128xf32> to vector<127x128xf32>
    %36 = tpu.concatenate %6, %35 in 0 : vector<1x128xf32>, vector<127x128xf32> -> vector<128x128xf32>
    %cst_12 = arith.constant 0.000000e+00 : f32
    %37 = vector.broadcast %cst_12 : f32 to vector<128x128xf32>
    %38 = arith.select %3, %37, %36 : vector<128x128xi1>, vector<128x128xf32>
    %39 = vector.extract_strided_slice %32 {offsets = [1, 0], sizes = [127, 128], strides = [1, 1]} : vector<128x128xf32> to vector<127x128xf32>
    %40 = tpu.concatenate %39, %6 in 0 : vector<127x128xf32>, vector<1x128xf32> -> vector<128x128xf32>
    %cst_13 = arith.constant 0.000000e+00 : f32
    %41 = vector.broadcast %cst_13 : f32 to vector<128x128xf32>
    %42 = arith.select %5, %41, %40 : vector<128x128xi1>, vector<128x128xf32>
    %43 = tpu.concatenate %38, %32, %42 in 1 : vector<128x128xf32>, vector<128x128xf32>, vector<128x128xf32> -> vector<128x384xf32>
    %44 = arith.truncf %43 : vector<128x384xf32> to vector<128x384xbf16>
    %cst_14 = arith.constant dense<0.000000e+00> : vector<128x128xf32>
    %45 = tpu.matmul %44, %34, %cst_14 {dimension_numbers = #tpu.dot_dimension_numbers<[1], [0], [0], [1], [0, 0, 1, 1], [], []>} : vector<128x384xbf16>, vector<384x128xbf16>, vector<128x128xf32> -> vector<128x128xf32>
    %46 = vector.broadcast %10 : vector<1x128xf32> to vector<128x128xf32>
    %47 = arith.mulf %45, %46 : vector<128x128xf32>
    %48 = vector.broadcast %11 : vector<1x128xf32> to vector<128x128xf32>
    %49 = arith.addf %47, %48 : vector<128x128xf32>
    %50 = arith.addf %49, %13 : vector<128x128xf32>
    %cst_15 = arith.constant 0.000000e+00 : f32
    %51 = vector.broadcast %cst_15 : f32 to vector<128x128xf32>
    %52 = arith.maximumf %50, %51 : vector<128x128xf32>
    %c0_16 = arith.constant 0 : index
    %c0_17 = arith.constant 0 : index
    %53 = vector.load %arg4[%c0_16, %c0_17] : memref<128x128xf32, #tpu.memory_space<vmem>>, vector<128x128xf32>
    tpu.vector_store %arg4[%c0_16, %c0_17], %52 {strides = array<i32>} : memref<128x128xf32, #tpu.memory_space<vmem>>, vector<128x128xf32>,
    return
  }
  func.func @transform_0(%arg0: i32) -> (i32, i32) {
    %c0_i32 = arith.constant 0 : i32
    %c0_i32_0 = arith.constant 0 : i32
    return %arg0, %c0_i32 : i32, i32
  }
  func.func @transform_1(%arg0: i32) -> (i32, i32, i32) {
    %c0_i32 = arith.constant 0 : i32
    %c0_i32_0 = arith.constant 0 : i32
    %c0_i32_1 = arith.constant 0 : i32
    %c0_i32_2 = arith.constant 0 : i32
    return %c0_i32, %c0_i32_0, %c0_i32_1 : i32, i32, i32
  }
  func.func @transform_2(%arg0: i32) -> (i32, i32) {
    %c0_i32 = arith.constant 0 : i32
    %c0_i32_0 = arith.constant 0 : i32
    %c0_i32_1 = arith.constant 0 : i32
    return %c0_i32, %c0_i32_0 : i32, i32
  }
  func.func @transform_3(%arg0: i32) -> (i32, i32) {
    %c0_i32 = arith.constant 0 : i32
    %c0_i32_0 = arith.constant 0 : i32
    return %arg0, %c0_i32 : i32, i32
  }
}

</mosaic_0001>

<bundles_post_ra>
// kernel: tpu_custom_call.1
= control target key start
LH: loop header
LB: loop body
LE: loop exit
PB: predicated region body
PF: predicated region fallthrough
CT: control target
= control target key end

     0   :  { %8 = vsyncpa [#allocation3], 0  ;;  %s2737_s0 = inlined_call_operand.hbm [shape: bf16[256,128], index: 0, kind: input, shape index: {}]   ;;  %s2738_s1 = inlined_call_operand.hbm [shape: bf16[2,384,128], index: 1, kind: input, shape index: {}]   ;;  %s2739_s2 = inlined_call_operand.hbm [shape: f32[4,128], index: 2, kind: input, shape index: {}]   ;;  %s2740_s3 = inlined_call_operand.hbm [shape: f32[256,128], index: 3, kind: output, shape index: {}]  }
   0x1   :  { %10 = vsyncpa [#allocation3 + $0x1], 0 }
   0x2   :  { %11 = vsyncpa [#allocation6], 0 }
   0x3   :  { %12 = vsyncpa [#allocation4], 0 }
   0x4   :  { %14 = vsyncpa [#allocation4 + $0x1], 0  ;;  %s2227_s12 = smov 0   ;;  %s2229_s13 = smov 0  }
   0x5   :  { %s2231_s14 = smov 0   ;;  %s2233_s15 = smov 0  }
   0x6 LB: > { %s2248_s16 = sadd.s32 4294967295, %s2198_s15   ;;  %s1521_s17 = sadd.s32 4294967294, %s2198_s15   ;;  %s2198_s15 = sphi %s2233_s15, %s2754_s15   ;;  %s2194_s14 = sphi %s2231_s14, %s2753_s14   ;;  %s2190_s13 = sphi %s2229_s13, %s2752_s13   ;;  %s2186_s12 = sphi %s2227_s12, %s2751_s12  }
   0x7   : > { %p40_p0 = scmp.ne.s32.totalorder %s2190_s13, %s2186_s12  ;;  %p41_p1 = scmp.eq.s32.totalorder %s2248_s16, 0 }
   0x8   : > { %p106_p2 = scmp.eq.s32.totalorder %s2248_s16, 1  ;;  %p112_p3 = scmp.eq.s32.totalorder %s1521_s17, 1 }
   0x9   : > { %p2257_p4 = por %p41_p1, %p40_p0  ;;  %p1522_p5 = scmp.ge.s32.totalorder %s2198_s15, 1 }
   0xa   : > { %p2262_p6 = por %p112_p3, %p40_p0  ;;  %p119_p7 = scmp.lt.s32.totalorder %s2198_s15, 3 }
   0xb   : > { %s130_s22 = sshll.u32 %s2738_s1, 4  ;;  %s2200_s24 = smov [#allocation5]   ;;  %s131_s22 = int_to_ptr.hbm [resolvable:$true] %s130_s22 }
   0xc   : > { %p2270_p8 = pnand %p1522_p5, %p119_p7  ;;  %s132_s25 = sshll.u32 %s2200_s24, 4  ;;  %s133_s25 = int_to_ptr.vmem [resolvable:$true] %s132_s25 }
   0xd   : > { %s145_s28 = sshll.u32 %s2739_s2, 4  ;;  %s2201_s29 = smov 64   ;;  %s146_s28 = int_to_ptr.hbm [resolvable:$true] %s145_s28 }
   0xe   : > { %p1978_p9 = pneg %p2270_p8  ;;  %s2202_s30 = smov 4  }
   0xf   : > { %s2203_s4 = smov [#allocation7]   ;;  %s2286_s6 = sadd.s32 1, %s2198_s15  }
  0x10   : > { %p1979_p10 = pnand %p1978_p9, %p41_p1  ;;  %s147_s5 = sshll.u32 %s2203_s4, 4  ;;  %s148_s5 = int_to_ptr.vmem [resolvable:$true] %s147_s5 }
  0x11   : > { %s27_s7 = sadd.s32 1, %s2194_s14  ;;  %s24_s8 = ssub.s32 %s2198_s15, %s2286_s6 }
  0x12   : > { %1981 = dma.hbm_to_vmem [thread:$0]  (!%p1979_p10), %s131_s22, 6144, %s133_s25, [#allocation6], %s2201_s29, %s2201_s29, %s2202_s30  }
  0x13   : > { %1984 = dma.hbm_to_vmem [thread:$0]  (!%p1979_p10), %s146_s28, 64, %s148_s5, [#allocation6]  }
  0x14   : > { %p34_p12 = scmp.ne.s32.totalorder %s2194_s14, %s2190_s13  ;;  %p25_p13 = scmp.eq.s32.totalorder %s24_s8, 0 }
  0x15   : > { %p35_p0 = scmp.eq.s32.totalorder %s2198_s15, 0  ;;  %p1995_p5 = scmp.lt.s32.totalorder %s2198_s15, 2 }
  0x16   : > { %p2296_p3 = por %p106_p2, %p34_p12  ;;  %s158_s11 = sand.u32 1, %s2194_s14  }
  0x17   : > { %s2302_s10 = scalar_select %p25_p13, %s2194_s14, %s27_s7  }
  0x18   : > { %p36_p7 = por %p35_p0, %p34_p12  ;;  %s1526_s17 = sshll.u32 %s158_s11, 6 }
  0x19   : > { %s1859_s20 = sshll.u32 %s2198_s15, 6  ;;  %s162_s25 = scalar_lea.vmem [#allocation2], %s1526_s17 }
  0x1a   : > { %s167_s24 = scalar_lea.hbm %s2737_s0, %s1859_s20  ;;  %s170_s26 = sshll.u32 %s162_s25, 4  ;;  %s171_s26 = int_to_ptr.vmem [resolvable:$true] %s170_s26 }
  0x1b   : > { %s168_s27 = sshll.u32 %s167_s24, 4  ;;  %p2309_p2 = pnand %p1995_p5, %p36_p7  ;;  %s169_s27 = int_to_ptr.hbm [resolvable:$true] %s168_s27 }
  0x1c   : > { %s159_s4 = scalar_lea.sflag [#allocation3], %s158_s11  ;;  %s2098_s5 = sshra.s32 %s169_s27, 4  ;;  %s2099_s5 = int_to_ptr.hbm [resolvable:$true] %s2098_s5 }
  0x1d   : > { %s2100_s7 = scalar_lea.hbm %s2099_s5, 64  ;;  %p2102_p10 = pneg %p2309_p2 }
  0x1e   : > { %p2101_p9 = scmp.ne.s32.totalorder %s2099_s5, %s2100_s7  ;;  %s2105_s20 = scalar_lea.hbm %s2737_s0, 128 }
  0x1f   : > { %p2106_p0 = scmp.lt.s32.totalorder %s2099_s5, %s2737_s0  ;;  %p2107_p5 = scmp.lt.s32.totalorder %s2105_s20, %s2100_s7 }
  0x20   : > { %p2103_p12 = pnand %p2102_p10, %p2101_p9 }
  0x21   : > { %p2108_p7 = por %p2107_p5, %p2106_p0 }
  0x22   : > { %p2104_p13 = pneg %p2103_p12 }
  0x24   : > { %p2109_p11 = pnand %p2108_p7, %p2104_p13 }
  0x26   : > { %2112 = shalt.err (!%p2109_p11)
}
  0x27   : > { %1988 = dma.hbm_to_vmem [thread:$0]  (!%p2309_p2), %s169_s27, 1024, %s171_s26, %s159_s4, %s2201_s29, %s2201_s29, %s2202_s30  }
  0x28   : > { %182 = sbr.rel (%p2270_p8) target bundleno = 565 (0x235), region = 32  ;;  %s2329_s11 = sand.u32 (!%p2270_p8), 1, %s2190_s13  }
  0x29   : > { %s1530_s24 = sshll.u32 (!%p2270_p8), %s2329_s11, 6  ;;  %s185_s25 = scalar_lea.sflag (!%p2270_p8), [#allocation3], %s2329_s11 }
  0x2a   : > { %s2333_s5 = scalar_lea.vmem (!%p2270_p8), [#allocation2], %s1530_s24 }
  0x2d   : > { %2173 = dma.done.wait (%p2257_p4), %s185_s25, 1024  }
  0x2e   : > { %2175 = vsyncadd (%p2257_p4), %s185_s25, 4294966272 }
  0x2f   : > { %2177 = dma.done.wait (%p41_p1), [#allocation6], 6208  }
  0x30   : > { %2179 = vsyncadd (%p41_p1), [#allocation6], 4294961088  ;;  %v1867_v0 = vld [vmem:[#allocation5 + $0x38] sm:$0xff]  ;;  %v1866_v2 = vld [vmem:[#allocation5 + $0x30] sm:$0xff]  ;;  %v224_v17 = vlaneseq  ;;  %vm328_vm0 = vcmask 1040384   ;;  %vm2204_vm2 = vmmov 1  }
  0x31   : > { %v1875_v1 = vld [vmem:[#allocation5 + $0x78] sm:$0xff]  ;;  %1950 = vmatpush.bf16.msra.mxu2 %v1867_v0  ;;  %v1874_v3 = vld [vmem:[#allocation5 + $0x70] sm:$0xff]  ;;  %626 = vmatpush.bf16.msra.mxu0 %v1867_v0  ;;  %v1865_v4 = vld [vmem:[#allocation5 + $0x28] sm:$0xff]  ;;  %vm393_vm4 = vcmask 1046528   ;;  %s1533_s18 = sshll.u32 %s2329_s11, 7  ;;  %s1908_s29 = sshll.u32 %s2248_s16, 7 }
  0x32   : > { %1958 = vmatpush.bf16.msra.mxu3 %v1875_v1  ;;  %675 = vmatpush.bf16.msra.mxu1 %v1875_v1  ;;  %v1873_v5 = vld [vmem:[#allocation5 + $0x68] sm:$0xff]  ;;  %v1864_v6 = vld [vmem:[#allocation5 + $0x20] sm:$0xff]  ;;  %v1863_v8 = vld [vmem:[#allocation5 + $0x18] sm:$0xff]  ;;  %v2357_v23 = vshrl.u32 %v224_v17, 7  ;;  %s2640_s23 = scalar_lea.vmem [#allocation8], %s1533_s18  ;;  %s1425_s27 = scalar_lea.hbm %s2740_s3, %s1908_s29 }
  0x33   : > { %v1872_v7 = vld [vmem:[#allocation5 + $0x60] sm:$0xff]  ;;  %v1871_v9 = vld [vmem:[#allocation5 + $0x58] sm:$0xff]  ;;  %v1862_v12 = vld [vmem:[#allocation5 + $0x10] sm:$0xff]  ;;  %s1426_s28 = sshll.u32 %s2640_s23, 4  ;;  %s1428_s4 = sshll.u32 %s1425_s27, 4  ;;  %s1427_s28 = int_to_ptr.vmem [resolvable:$true] %s1426_s28  ;;  %s1429_s4 = int_to_ptr.hbm [resolvable:$true] %s1428_s4 }
  0x34   : > { %v2344_v10 = vld [vmem:[%s2333_s5 + $0x18] sm:$0xff]   ;;  %v1944_v11 = vld [vmem:[%s2333_s5 + $0x20] sm:$0xff]   ;;  %v1870_v13 = vld [vmem:[#allocation5 + $0x50] sm:$0xff]  ;;  %vm1948_vm1 = vcmp.ne.s32.totalorder %v2357_v23, 0  ;;  %s1414_s16 = scalar_lea.sflag [#allocation4], %s2329_s11  ;;  %s2142_s7 = sshra.s32 %s1429_s4, 4  ;;  %s2143_s7 = int_to_ptr.hbm [resolvable:$true] %s2142_s7 }
  0x35   : > { %1951 = vmatpush.bf16.msra.mxu2 %v1866_v2  ;;  %627 = vmatpush.bf16.msra.mxu0 %v1866_v2  ;;  %v2348_v14 = vunpack.c.h.bf16 %v2344_v10  ;;  %v2350_v15 = vunpack.c.l.bf16 %v1944_v11  ;;  %v2352_v16 = vunpack.c.h.bf16 %v1944_v11  ;;  %v1861_v18 = vld [vmem:[#allocation5 + $0x8] sm:$0xff]  ;;  %v1860_v24 = vld [vmem:[#allocation5] sm:$0xff]  ;;  %v1883_v28 = vld [vmem:[#allocation5 + $0xb8] sm:$0xff]  ;;  %s2144_s8 = scalar_lea.hbm %s2143_s7, 128  ;;  %s2148_s21 = scalar_lea.hbm %s2740_s3, 256 }
  0x36   : > { %1959 = vmatpush.bf16.msra.mxu3 %v1874_v3  ;;  %676 = vmatpush.bf16.msra.mxu1 %v1874_v3  ;;  %v1869_v19 = vld [vmem:[#allocation5 + $0x48] sm:$0xff]  ;;  %v1868_v25 = vld [vmem:[#allocation5 + $0x40] sm:$0xff]  ;;  %vm2365_vm3 = vmpackc.low %vm2204_vm2, %vm1948_vm1  ;;  %p2145_p1 = scmp.ne.s32.totalorder %s2143_s7, %s2144_s8  ;;  %p2149_p11 = scmp.lt.s32.totalorder %s2143_s7, %s2740_s3 }
  0x37   : > { %v342_v20 = vrot.slane %v2348_v14, 7  ;;  %v344_v21 = vrot.slane %v2350_v15, 7  ;;  %v346_v22 = vrot.slane %v2352_v16, 7  ;;  %v1882_v31 = vld [vmem:[#allocation5 + $0xb0] sm:$0xff]  ;;  %v1945_v32 = vld [vmem:[%s2333_s5 + $0x28] sm:$0xff]   ;;  %v1880_v38 = vld [vmem:[#allocation5 + $0xa0] sm:$0xff]  ;;  %p2150_p2 = scmp.lt.s32.totalorder %s2148_s21, %s2144_s8 }
  0x38   : > { %v2372_v33 = vunpack.c.l.bf16 %v1945_v32  ;;  %v2374_v34 = vunpack.c.h.bf16 %v1945_v32  ;;  %v1881_v35 = vld [vmem:[#allocation5 + $0xa8] sm:$0xff]  ;;  %v1879_v41 = vld [vmem:[#allocation5 + $0x98] sm:$0xff]  ;;  %v1946_v43 = vld [vmem:[%s2333_s5 + $0x30] sm:$0xff]   ;;  %p2146_p4 = pnand %p2145_p1, %p2296_p3 }
  0x39   : > { %1952 = vmatpush.bf16.msra.mxu2 %v1865_v4  ;;  %628 = vmatpush.bf16.msra.mxu0 %v1865_v4  ;;  %v345_v26 = vsel %vm328_vm0, %v342_v20, %v344_v21  ;;  %v347_v27 = vsel %vm328_vm0, %v344_v21, %v346_v22  ;;  %v1878_v44 = vld [vmem:[#allocation5 + $0x90] sm:$0xff]  ;;  %v1910_v45 = vld [vmem:[%s2333_s5] sm:$0xff]   ;;  %v2384_v46 = vunpack.c.l.bf16 %v1946_v43  ;;  %v2386_v47 = vunpack.c.h.bf16 %v1946_v43  ;;  %v1877_v50 = vld [vmem:[#allocation5 + $0x88] sm:$0xff]  ;;  %p2151_p9 = por %p2150_p2, %p2149_p11 }
  0x3a   : > { %1960 = vmatpush.bf16.msra.mxu3 %v1873_v5  ;;  %677 = vmatpush.bf16.msra.mxu1 %v1873_v5  ;;  %v1648_v29 = vpack.c.bf16 %v347_v27, %v345_v26  ;;  %v348_v36 = vrot.slane %v2372_v33, 7  ;;  %v350_v37 = vrot.slane %v2374_v34, 7  ;;  %v2388_v48 = vunpack.c.l.bf16 %v1910_v45  ;;  %v1876_v57 = vld [vmem:[#allocation5 + $0x80] sm:$0xff]  ;;  %v1941_v61 = vld [vmem:[%s2333_s5 + $0x8] sm:$0xff]   ;;  %v1947_v63 = vld [vmem:[%s2333_s5 + $0x38] sm:$0xff]   ;;  %p2147_p8 = pneg %p2146_p4 }
  0x3b   : > { %v2390_v49 = vunpack.c.h.bf16 %v1910_v45  ;;  %v352_v53 = vrot.slane %v2384_v46, 7  ;;  %v354_v54 = vrot.slane %v2386_v47, 7  ;;  %v2404_v0 = vunpack.c.l.bf16 %v1941_v61  ;;  %v1942_v17 = vld [vmem:[%s2333_s5 + $0x10] sm:$0xff]  }
  0x3c   : > { %v349_v39 = vsel %vm328_vm0, %v346_v22, %v348_v36  ;;  %v351_v40 = vsel %vm328_vm0, %v348_v36, %v350_v37  ;;  %v329_v51 = vrot.slane %v2388_v48, 7  ;;  %v2408_v1 = vunpack.c.h.bf16 %v1941_v61  ;;  %p2152_p10 = pnand %p2151_p9, %p2147_p8 }
  0x3d   : > { %1953 = vmatpush.bf16.msra.mxu2 %v1864_v6  ;;  %629 = vmatpush.bf16.msra.mxu0 %v1864_v6  ;;  %v1652_v42 = vpack.c.bf16 %v351_v40, %v349_v39  ;;  %v330_v52 = vrot.slane %v2390_v49, 7  ;;  %v353_v59 = vsel %vm328_vm0, %v350_v37, %v352_v53  ;;  %v355_v60 = vsel %vm328_vm0, %v352_v53, %v354_v54 }
  0x3e   : > { %1961 = vmatpush.bf16.msra.mxu3 %v1872_v7  ;;  %678 = vmatpush.bf16.msra.mxu1 %v1872_v7  ;;  %v376_v56 = vsel %vm328_vm0, 0.0, %v329_v51  ;;  %v1656_v62 = vpack.c.bf16 %v355_v60, %v353_v59  ;;  %v332_v2 = vrot.slane %v2404_v0, 7  ;;  %v2411_v3 = vunpack.c.l.bf16 %v1947_v63  ;;  %v1891_v60 = vld [vmem:[#allocation5 + $0xf8] sm:$0xff] }
  0x3f   : > { %v331_v55 = vsel %vm328_vm0, %v329_v51, %v330_v52  ;;  %v2413_v4 = vunpack.c.h.bf16 %v1947_v63  ;;  %v334_v6 = vrot.slane %v2408_v1, 7  ;;  %v2429_v21 = vunpack.c.h.bf16 %v1942_v17 }
  0x40   : > { %v1632_v58 = vpack.c.bf16 %v331_v55, %v376_v56  ;;  %v333_v5 = vsel %vm328_vm0, %v330_v52, %v332_v2  ;;  %v394_v27 = vrot.slane %v2388_v48, 1  ;;  %v2449_v39 = vunpack.c.l.bf16 %v2344_v10 }
  0x41   : > { %1954 = vmatpush.bf16.msra.mxu2 %v1863_v8  ;;  %630 = vmatpush.bf16.msra.mxu0 %v1863_v8  ;;  %v335_v7 = vsel %vm328_vm0, %v332_v2, %v334_v6  ;;  %v356_v8 = vrot.slane %v2411_v3, 7  ;;  %v407_v55 = vrot.slane %v2348_v14, 1  ;;  %v409_v56 = vrot.slane %v2350_v15, 1 }
  0x42   : > { %1962 = vmatpush.bf16.msra.mxu3 %v1871_v9  ;;  %679 = vmatpush.bf16.msra.mxu1 %v1871_v9  ;;  %v358_v9 = vrot.slane %v2413_v4, 7 }
  0x45   : > { %1955 = vmatpush.bf16.msra.mxu2 %v1862_v12  ;;  %631 = vmatpush.bf16.msra.mxu0 %v1862_v12  ;;  %v357_v12 = vsel %vm328_vm0, %v354_v54, %v356_v8 }
  0x46   : > { %1963 = vmatpush.bf16.msra.mxu3 %v1870_v13  ;;  %680 = vmatpush.bf16.msra.mxu1 %v1870_v13  ;;  %v359_v13 = vsel %vm328_vm0, %v356_v8, %v358_v9  ;;  %v1907_v8 = vld [vmem:[#allocation5 + $0x178] sm:$0xff] }
  0x49   : > { %1956 = vmatpush.bf16.msra.mxu2 %v1861_v18  ;;  %632 = vmatpush.bf16.msra.mxu0 %v1861_v18  ;;  %v1660_v18 = vpack.c.bf16 %v359_v13, %v357_v12  ;;  %v1889_v12 = vld [vmem:[#allocation5 + $0xe8] sm:$0xff]  ;;  %v1906_v13 = vld [vmem:[#allocation5 + $0x170] sm:$0xff] }
  0x4a   : > { %1964 = vmatpush.bf16.msra.mxu3 %v1869_v19  ;;  %681 = vmatpush.bf16.msra.mxu1 %v1869_v19  ;;  %v2425_v19 = vunpack.c.l.bf16 %v1942_v17 }
  0x4c   : > { %v336_v22 = vrot.slane %v2425_v19, 7 }
  0x4d   : > { %1957 = vmatpush.bf16.msra.mxu2 %v1860_v24  ;;  %633 = vmatpush.bf16.msra.mxu0 %v1860_v24 }
  0x4e   : > { %1965 = vmatpush.bf16.msra.mxu3 %v1868_v25  ;;  %682 = vmatpush.bf16.msra.mxu1 %v1868_v25  ;;  %v337_v24 = vsel %vm328_vm0, %v334_v6, %v336_v22  ;;  %v338_v25 = vrot.slane %v2429_v21, 7  ;;  %v1899_v6 = vld [vmem:[#allocation5 + $0x138] sm:$0xff] }
  0x50   : > { %1649 = vmatmul.msk.bf16.vlgmr.msra.gmra.mxu2 %vm2365_vm3, %v1648_v29  ;;  %1633 = vmatmul.msk.bf16.vlgmr.msra.gmra.mxu0 %vm2365_vm3, %v1632_v58  ;;  %v339_v26 = vsel %vm328_vm0, %v336_v22, %v338_v25  ;;  %v397_v29 = vrot.slane %v2404_v0, 1  ;;  %v410_v58 = vsel %vm393_vm4, %v407_v55, %v409_v56 }
  0x51   : > { %724 = vmatpush.bf16.msrb.mxu2 %v1883_v28  ;;  %703 = vmatmul.bf16.vlgmr.msra.gmra.mxu3 %v1944_v11  ;;  %v1636_v11 = vpack.c.bf16 %v335_v7, %v333_v5  ;;  %v395_v28 = vrot.slane %v2390_v49, 1  ;;  %v1890_v7 = vld [vmem:[#allocation5 + $0xf0] sm:$0xff] }
  0x52   : > { %683 = vmatmul.bf16.vlgmr.msra.gmra.mxu1 %v1910_v45  ;;  %1184 = vmatpush.bf16.msrb.mxu3 %v1891_v60 }
  0x53   : > { %v398_v36 = vsel %vm393_vm4, %v395_v28, %v397_v29  ;;  %1233 = vmatpush.bf16.msrb.mxu0 %v1899_v6  ;;  %1282 = vmatpush.bf16.msrb.mxu1 %v1907_v8  ;;  %v1900_v8 = vld [vmem:[#allocation5 + $0x140] sm:$0xff] }
  0x55   : > { %725 = vmatpush.bf16.msrb.mxu2 %v1882_v31  ;;  %v1640_v31 = vpack.c.bf16 %v339_v26, %v337_v24 }
  0x56   : > { %1185 = vmatpush.bf16.msrb.mxu3 %v1890_v7 }
  0x57   : > { %1283 = vmatpush.bf16.msrb.mxu1 %v1906_v13 }
  0x59   : > { %726 = vmatpush.bf16.msrb.mxu2 %v1881_v35  ;;  %v396_v35 = vsel %vm393_vm4, %v394_v27, %v395_v28  ;;  %v1897_v27 = vld [vmem:[#allocation5 + $0x128] sm:$0xff]  ;;  %v1888_v28 = vld [vmem:[#allocation5 + $0xe0] sm:$0xff] }
  0x5a   : > { %v1664_v37 = vpack.c.bf16 %v398_v36, %v396_v35  ;;  %1186 = vmatpush.bf16.msrb.mxu3 %v1889_v12  ;;  %v1887_v35 = vld [vmem:[#allocation5 + $0xd8] sm:$0xff]  ;;  %v1904_v36 = vld [vmem:[#allocation5 + $0x160] sm:$0xff] }
  0x5d   : > { %727 = vmatpush.bf16.msrb.mxu2 %v1880_v38 }
  0x5e   : > { %1187 = vmatpush.bf16.msrb.mxu3 %v1888_v28 }
  0x60   : > { %1653 = vmatmul.msk.bf16.gmra.mxu2 %vm2365_vm3, %v1652_v42  ;;  %1637 = vmatmul.msk.bf16.gmra.mxu0 %vm2365_vm3, %v1636_v11  ;;  %v1898_v11 = vld [vmem:[#allocation5 + $0x130] sm:$0xff] }
  0x61   : > { %728 = vmatpush.bf16.msrb.mxu2 %v1879_v41  ;;  %708 = vmatmul.bf16.gmra.mxu3 %v1945_v32  ;;  %v226_v32 = vadd.s32 8, %v2357_v23  ;;  %v340_v23 = vrot.slane %v2449_v39, 7 }
  0x62   : > { %688 = vmatmul.bf16.gmra.mxu1 %v1941_v61  ;;  %v411_v61 = vrot.slane %v2352_v16, 1  ;;  %1234 = vmatpush.bf16.msrb.mxu0 %v1898_v11  ;;  %v2518_v11 = vld [vmem:[#allocation7] sm:$0xf] }
  0x63   : > { %vm1949_vm5 = vcmp.ne.s32.totalorder %v226_v32, 15  ;;  %v341_v40 = vsel %vm328_vm0, %v338_v25, %v340_v23  ;;  %v343_v41 = vsel %vm328_vm0, %v340_v23, %v342_v20  ;;  %v405_v20 = vrot.slane %v2449_v39, 1  ;;  %v1896_v32 = vld [vmem:[#allocation5 + $0x120] sm:$0xff]  ;;  %1188 = vmatpush.bf16.msrb.mxu3 %v1887_v35 }
  0x64   : > { %vm2444_vm6 = vmpackc.low %vm1949_vm5, %vm2204_vm2  ;;  %v1644_v42 = vpack.c.bf16 %v343_v41, %v341_v40  ;;  %v421_v23 = vrot.slane %v2411_v3, 1  ;;  %v2521_v13 = vperm.slane %v2518_v11, 0 }
  0x65   : > { %729 = vmatpush.bf16.msrb.mxu2 %v1878_v44  ;;  %v401_v44 = vrot.slane %v2425_v19, 1 }
  0x66   : > { %1235 = vmatpush.bf16.msrb.mxu0 %v1897_v27  ;;  %v2525_v27 = vperm.slane %v2518_v11, 1 }
  0x69   : > { %730 = vmatpush.bf16.msrb.mxu2 %v1877_v50 }
  0x6a   : > { %1236 = vmatpush.bf16.msrb.mxu0 %v1896_v32 }
  0x6d   : > { %731 = vmatpush.bf16.msrb.mxu2 %v1876_v57  ;;  %v408_v57 = vsel %vm393_vm4, %v405_v20, %v407_v55 }
  0x6e   : > { %v1676_v59 = vpack.c.bf16 %v410_v58, %v408_v57  ;;  %v1902_v57 = vld [vmem:[#allocation5 + $0x150] sm:$0xff]  ;;  %v1893_v58 = vld [vmem:[#allocation5 + $0x108] sm:$0xff] }
  0x70   : > { %1657 = vmatmul.msk.bf16.gmra.mxu2 %vm2365_vm3, %v1656_v62  ;;  %1641 = vmatmul.msk.bf16.gmra.mxu0 %vm2365_vm3, %v1640_v31  ;;  %v413_v62 = vrot.slane %v2372_v33, 1 }
  0x71   : > { %713 = vmatmul.bf16.gmra.mxu3 %v1946_v43  ;;  %v399_v43 = vrot.slane %v2408_v1, 1 }
  0x72   : > { %693 = vmatmul.bf16.gmra.mxu1 %v1942_v17  ;;  %v414_v2 = vsel %vm393_vm4, %v411_v61, %v413_v62  ;;  %v415_v17 = vrot.slane %v2374_v34, 1 }
  0x73   : > { %v400_v45 = vsel %vm393_vm4, %v397_v29, %v399_v43  ;;  %v402_v50 = vsel %vm393_vm4, %v399_v43, %v401_v44  ;;  %v1905_v29 = vld [vmem:[#allocation5 + $0x168] sm:$0xff] }
  0x74   : > { %v1668_v51 = vpack.c.bf16 %v402_v50, %v400_v45  ;;  %v416_v22 = vsel %vm393_vm4, %v413_v62, %v415_v17  ;;  %1284 = vmatpush.bf16.msrb.mxu1 %v1905_v29  ;;  %v1886_v45 = vld [vmem:[#allocation5 + $0xd0] sm:$0xff]  ;;  %v1903_v50 = vld [vmem:[#allocation5 + $0x158] sm:$0xff] }
  0x75   : > { %1189 = vmatpush.bf16.msrb.mxu3 %v1886_v45 }
  0x78   : > { %1285 = vmatpush.bf16.msrb.mxu1 %v1904_v36 }
  0x7c   : > { %1286 = vmatpush.bf16.msrb.mxu1 %v1903_v50 }
  0x80   : > { %1661 = vmatmul.msk.bf16.gmra.mxu2 %vm2365_vm3, %v1660_v18  ;;  %1645 = vmatmul.msk.bf16.gmra.mxu0 %vm2365_vm3, %v1644_v42  ;;  %v417_v18 = vrot.slane %v2384_v46, 1 }
  0x81   : > { %718 = vmatmul.bf16.gmra.mxu3 %v1947_v63  ;;  %v412_v63 = vsel %vm393_vm4, %v409_v56, %v411_v61  ;;  %v1885_v56 = vld [vmem:[#allocation5 + $0xc8] sm:$0xff]  ;;  %1287 = vmatpush.bf16.msrb.mxu1 %v1902_v57  ;;  %v1892_v61 = vld [vmem:[#allocation5 + $0x100] sm:$0xff] }
  0x82   : > { %698 = vmatmul.bf16.gmra.mxu1 %v2344_v10  ;;  %v403_v10 = vrot.slane %v2429_v21, 1  ;;  %v1680_v5 = vpack.c.bf16 %v414_v2, %v412_v63  ;;  %v418_v24 = vsel %vm393_vm4, %v415_v17, %v417_v18  ;;  %1190 = vmatpush.bf16.msrb.mxu3 %v1885_v56  ;;  %v1884_v63 = vld [vmem:[#allocation5 + $0xc0] sm:$0xff]  ;;  %v1901_v2 = vld [vmem:[#allocation5 + $0x148] sm:$0xff] }
  0x83   : > { %v1684_v26 = vpack.c.bf16 %v418_v24, %v416_v22 }
  0x84   : > { %v404_v52 = vsel %vm393_vm4, %v401_v44, %v403_v10  ;;  %v406_v53 = vsel %vm393_vm4, %v403_v10, %v405_v20  ;;  %v1895_v44 = vld [vmem:[#allocation5 + $0x118] sm:$0xff]  ;;  %v423_v10 = vrot.slane %v2413_v4, 1 }
  0x85   : > { %v1672_v54 = vpack.c.bf16 %v406_v53, %v404_v52  ;;  %1237 = vmatpush.bf16.msrb.mxu0 %v1895_v44  ;;  %v1894_v53 = vld [vmem:[#allocation5 + $0x110] sm:$0xff]  ;;  %1288 = vmatpush.bf16.msrb.mxu1 %v1901_v2 }
  0x86   : > { %v424_v20 = vsel %vm393_vm4, %v421_v23, %v423_v10  ;;  %v441_v52 = vsel %vm393_vm4, %v423_v10, 0.0  ;;  %1191 = vmatpush.bf16.msrb.mxu3 %v1884_v63 }
  0x87   : > { %v1692_v55 = vpack.c.bf16 %v441_v52, %v424_v20 }
  0x89   : > { %1238 = vmatpush.bf16.msrb.mxu0 %v1894_v53  ;;  %1289 = vmatpush.bf16.msrb.mxu1 %v1900_v8 }
  0x8d   : > { %1239 = vmatpush.bf16.msrb.mxu0 %v1893_v58 }
  0x90   : > { %1665 = vmatmul.msk.bf16.vlgmr.msrb.gmra.mxu2 %vm2444_vm6, %v1664_v37  ;;  %v419_v37 = vrot.slane %v2386_v47, 1 }
  0x91   : > { %1240 = vmatpush.bf16.msrb.mxu0 %v1892_v61 }
  0x92   : > { %v420_v40 = vsel %vm393_vm4, %v417_v18, %v419_v37  ;;  %v422_v41 = vsel %vm393_vm4, %v419_v37, %v421_v23 }
  0x93   : > { %v1688_v43 = vpack.c.bf16 %v422_v41, %v420_v40 }
  0xa0   : > { %1669 = vmatmul.msk.bf16.gmra.mxu2 %vm2444_vm6, %v1668_v51 }
  0xb0   : > { %1673 = vmatmul.msk.bf16.gmra.mxu2 %vm2444_vm6, %v1672_v54 }
  0xc0   : > { %1677 = vmatmul.msk.bf16.gmra.mxu2 %vm2444_vm6, %v1676_v59 }
  0xcd   : > { %v635_v59 = vpop.f32.mrf.mxu0 }
  0xcf   : > { %v684_v60 = vpop.f32.mrf.mxu1 }
  0xd0   : > { %1681 = vmatmul.msk.bf16.gmra.mxu2 %vm2444_vm6, %v1680_v5  ;;  %v685_v12 = vadd.f32 %v684_v60, %v635_v59 }
  0xd3   : > { %v2485_v9 = vpop.f32.mrf.mxu2 }
  0xd5   : > { %v637_v5 = vpop.f32.mrf.mxu0 }
  0xd7   : > { %v686_v7 = vpop.f32.mrf.mxu1 }
  0xd8   : > { %v687_v28 = vadd.f32 %v686_v7, %v637_v5 }
  0xdb   : > { %v2491_v25 = vpop.f32.mrf.mxu2 }
  0xdd   : > { %v640_v22 = vpop.f32.mrf.mxu0 }
  0xdf   : > { %v689_v24 = vpop.f32.mrf.mxu1 }
  0xe0   : > { %1685 = vmatmul.msk.bf16.gmra.mxu2 %vm2444_vm6, %v1684_v26  ;;  %v690_v41 = vadd.f32 %v689_v24, %v640_v22 }
  0xe3   : > { %v2495_v31 = vpop.f32.mrf.mxu2 }
  0xe5   : > { %v642_v23 = vpop.f32.mrf.mxu0 }
  0xe7   : > { %v691_v40 = vpop.f32.mrf.mxu1 }
  0xe8   : > { %v692_v63 = vadd.f32 %v691_v40, %v642_v23 }
  0xeb   : > { %v2501_v42 = vpop.f32.mrf.mxu2 }
  0xed   : > { %v645_v59 = vpop.f32.mrf.mxu0 }
  0xef   : > { %v694_v60 = vpop.f32.mrf.mxu1 }
  0xf0   : > { %1689 = vmatmul.msk.bf16.gmra.mxu2 %vm2444_vm6, %v1688_v43 }
  0xf3   : > { %v2505_v51 = vpop.f32.mrf.mxu2 }
  0xfb   : > { %v2510_v54 = vpop.f32.mrf.mxu2 }
 0x100   : > { %1693 = vmatmul.msk.bf16.gmra.mxu2 %vm2444_vm6, %v1692_v55 }
 0x103   : > { %v2514_v62 = vpop.f32.mrf.mxu2 }
 0x10b   : > { %v2516_v6 = vpop.f32.mrf.mxu2 }
 0x113   : > { %v733_v17 = vpop.f32.mrf.mxu2 }
 0x114   : > { %v734_v18 = vadd.f32 %v733_v17, %v685_v12 }
 0x116   : > { %v774_v26 = vmul.f32 %v2521_v13, %v734_v18 }
 0x118   : > { %v791_v29 = vadd.f32 %v2525_v27, %v774_v26  ;;  %v695_v26 = vadd.f32 %v694_v60, %v645_v59 }
 0x11a   : > { %v807_v36 = vmax.f32 %v791_v29, 0.0 }
 0x11b   : > { %v735_v32 = vpop.f32.mrf.mxu2 }
 0x11c   : > { %v736_v35 = vadd.f32 %v735_v32, %v687_v28  ;;  %v888_v44 = vrot.slane %v807_v36, 7  ;;  %v952_v7 = vrot.slane %v807_v36, 1  ;;  %v647_v32 = vpop.f32.mrf.mxu0 }
 0x11e   : > { %v775_v37 = vmul.f32 %v2521_v13, %v736_v35  ;;  %v935_v56 = vsel %vm328_vm0, 0.0, %v888_v44 }
 0x120   : > { %v792_v43 = vadd.f32 %v2525_v27, %v775_v37  ;;  %v696_v37 = vpop.f32.mrf.mxu1 }
 0x122   : > { %v808_v45 = vmax.f32 %v792_v43, 0.0 }
 0x123   : > { %v738_v50 = vpop.f32.mrf.mxu2 }
 0x124   : > { %v889_v10 = vrot.slane %v808_v45, 7  ;;  %v739_v20 = vadd.f32 %v738_v50, %v690_v41  ;;  %v1017_v52 = vpack.c.bf16 %v808_v45, %v807_v36  ;;  %v953_v61 = vrot.slane %v808_v45, 1  ;;  %v650_v59 = vpop.f32.mrf.mxu0 }
 0x126   : > { %v776_v53 = vmul.f32 %v2521_v13, %v739_v20  ;;  %1241 = vmatmul.bf16.vlgmr.msrb.gmra.mxu0 %v1017_v52  ;;  %v890_v55 = vsel %vm328_vm0, %v888_v44, %v889_v10  ;;  %v954_v18 = vsel %vm393_vm4, %v952_v7, %v953_v61  ;;  %v697_v52 = vadd.f32 %v696_v37, %v647_v32 }
 0x127   : > { %v1792_v57 = vpack.c.bf16 %v890_v55, %v935_v56 }
 0x128   : > { %v793_v58 = vadd.f32 %v2525_v27, %v776_v53  ;;  %v699_v60 = vpop.f32.mrf.mxu1 }
 0x129   : > { %1793 = vmatmul.msk.bf16.vlgmr.msrb.gmra.mxu3 %vm2365_vm3, %v1792_v57 }
 0x12a   : > { %v809_v2 = vmax.f32 %v793_v58, 0.0 }
 0x12b   : > { %v740_v5 = vpop.f32.mrf.mxu2 }
 0x12c   : > { %v955_v8 = vrot.slane %v809_v2, 1  ;;  %v741_v12 = vadd.f32 %v740_v5, %v692_v63  ;;  %v891_v35 = vrot.slane %v809_v2, 7  ;;  %v700_v5 = vadd.f32 %v699_v60, %v650_v59 }
 0x12e   : > { %v777_v17 = vmul.f32 %v2521_v13, %v741_v12  ;;  %v956_v22 = vsel %vm393_vm4, %v953_v61, %v955_v8  ;;  %v892_v44 = vsel %vm328_vm0, %v889_v10, %v891_v35  ;;  %v704_v12 = vpop.f32.mrf.mxu3 }
 0x12f   : > { %v1824_v24 = vpack.c.bf16 %v956_v22, %v954_v18  ;;  %v705_v59 = vadd.f32 %v704_v12, %v2485_v9 }
 0x130   : > { %v794_v28 = vadd.f32 %v2525_v27, %v777_v17  ;;  %v701_v37 = vpop.f32.mrf.mxu1 }
 0x131   : > { %1825 = vmatmul.msk.bf16.vlgmr.msrb.gmra.mxu1 %vm2444_vm6, %v1824_v24 }
 0x132   : > { %v810_v29 = vmax.f32 %v794_v28, 0.0 }
 0x133   : > { %v743_v36 = vpop.f32.mrf.mxu2 }
 0x134   : > { %v744_v23 = vadd.f32 %v743_v36, %v695_v26  ;;  %v1020_v40 = vpack.c.bf16 %v810_v29, %v809_v2  ;;  %v893_v41 = vrot.slane %v810_v29, 7  ;;  %v957_v55 = vrot.slane %v810_v29, 1 }
 0x136   : > { %v778_v43 = vmul.f32 %v2521_v13, %v744_v23  ;;  %1246 = vmatmul.bf16.gmra.mxu0 %v1020_v40  ;;  %v894_v45 = vsel %vm328_vm0, %v891_v35, %v893_v41  ;;  %v958_v10 = vsel %vm393_vm4, %v955_v8, %v957_v55  ;;  %v652_v35 = vpop.f32.mrf.mxu0 }
 0x137   : > { %v1796_v50 = vpack.c.bf16 %v894_v45, %v892_v44  ;;  %v702_v40 = vadd.f32 %v701_v37, %v652_v35  ;;  %v706_v45 = vpop.f32.mrf.mxu3 }
 0x138   : > { %v795_v20 = vadd.f32 %v2525_v27, %v778_v43  ;;  %v707_v9 = vadd.f32 %v706_v45, %v2491_v25 }
 0x139   : > { %1797 = vmatmul.msk.bf16.gmra.mxu3 %vm2365_vm3, %v1796_v50 }
 0x13a   : > { %v811_v53 = vmax.f32 %v795_v20, 0.0 }
 0x13b   : > { %v745_v56 = vpop.f32.mrf.mxu2 }
 0x13c   : > { %v746_v57 = vadd.f32 %v745_v56, %v697_v52  ;;  %v959_v58 = vrot.slane %v811_v53, 1  ;;  %v895_v18 = vrot.slane %v811_v53, 7 }
 0x13e   : > { %v779_v61 = vmul.f32 %v2521_v13, %v746_v57  ;;  %v960_v63 = vsel %vm393_vm4, %v957_v55, %v959_v58  ;;  %v896_v8 = vsel %vm328_vm0, %v893_v41, %v895_v18 }
 0x13f   : > { %v1828_v2 = vpack.c.bf16 %v960_v63, %v958_v10 }
 0x140   : > { %v796_v7 = vadd.f32 %v2525_v27, %v779_v61 }
 0x141   : > { %1829 = vmatmul.msk.bf16.gmra.mxu1 %vm2444_vm6, %v1828_v2 }
 0x142   : > { %v812_v17 = vmax.f32 %v796_v7, 0.0  ;;  %v709_v7 = vpop.f32.mrf.mxu3 }
 0x143   : > { %v748_v22 = vpop.f32.mrf.mxu2  ;;  %v710_v25 = vadd.f32 %v709_v7, %v2495_v31 }
 0x144   : > { %v749_v24 = vadd.f32 %v748_v22, %v700_v5  ;;  %v1023_v26 = vpack.c.bf16 %v812_v17, %v811_v53  ;;  %v897_v28 = vrot.slane %v812_v17, 7  ;;  %v961_v44 = vrot.slane %v812_v17, 1 }
 0x146   : > { %v780_v29 = vmul.f32 %v2521_v13, %v749_v24  ;;  %1251 = vmatmul.bf16.gmra.mxu0 %v1023_v26  ;;  %v898_v32 = vsel %vm328_vm0, %v895_v18, %v897_v28  ;;  %v962_v41 = vsel %vm393_vm4, %v959_v58, %v961_v44 }
 0x147   : > { %v1800_v36 = vpack.c.bf16 %v898_v32, %v896_v8 }
 0x148   : > { %v797_v23 = vadd.f32 %v2525_v27, %v780_v29 }
 0x149   : > { %1801 = vmatmul.msk.bf16.gmra.mxu3 %vm2365_vm3, %v1800_v36 }
 0x14a   : > { %v813_v43 = vmax.f32 %v797_v23, 0.0  ;;  %v711_v36 = vpop.f32.mrf.mxu3 }
 0x14b   : > { %v750_v50 = vpop.f32.mrf.mxu2 }
 0x14c   : > { %v751_v20 = vadd.f32 %v750_v50, %v702_v40  ;;  %v963_v52 = vrot.slane %v813_v43, 1  ;;  %v899_v61 = vrot.slane %v813_v43, 7 }
 0x14e   : > { %v781_v53 = vmul.f32 %v2521_v13, %v751_v20  ;;  %v964_v55 = vsel %vm393_vm4, %v961_v44, %v963_v52  ;;  %v900_v58 = vsel %vm328_vm0, %v897_v28, %v899_v61 }
 0x14f   : > { %v1832_v56 = vpack.c.bf16 %v964_v55, %v962_v41 }
 0x150   : > { %v798_v57 = vadd.f32 %v2525_v27, %v781_v53 }
 0x151   : > { %1833 = vmatmul.msk.bf16.gmra.mxu1 %vm2444_vm6, %v1832_v56 }
 0x152   : > { %v814_v60 = vmax.f32 %v798_v57, 0.0  ;;  %v714_v31 = vpop.f32.mrf.mxu3 }
 0x153   : > { %v753_v10 = vpop.f32.mrf.mxu2 }
 0x154   : > { %v754_v63 = vadd.f32 %v753_v10, %v705_v59  ;;  %v1026_v2 = vpack.c.bf16 %v814_v60, %v813_v43  ;;  %v901_v5 = vrot.slane %v814_v60, 7  ;;  %v965_v26 = vrot.slane %v814_v60, 1 }
 0x156   : > { %v782_v17 = vmul.f32 %v2521_v13, %v754_v63  ;;  %1256 = vmatmul.bf16.gmra.mxu0 %v1026_v2  ;;  %v902_v18 = vsel %vm328_vm0, %v899_v61, %v901_v5  ;;  %v966_v37 = vsel %vm393_vm4, %v963_v52, %v965_v26  ;;  %v712_v61 = vadd.f32 %v711_v36, %v2501_v42 }
 0x157   : > { %v1804_v22 = vpack.c.bf16 %v902_v18, %v900_v58 }
 0x158   : > { %v799_v24 = vadd.f32 %v2525_v27, %v782_v17 }
 0x159   : > { %1805 = vmatmul.msk.bf16.gmra.mxu3 %vm2365_vm3, %v1804_v22 }
 0x15a   : > { %v815_v12 = vmax.f32 %v799_v24, 0.0 }
 0x15b   : > { %v755_v29 = vpop.f32.mrf.mxu2 }
 0x15c   : > { %v756_v8 = vadd.f32 %v755_v29, %v707_v9  ;;  %v967_v32 = vrot.slane %v815_v12, 1  ;;  %v903_v44 = vrot.slane %v815_v12, 7  ;;  %v715_v9 = vadd.f32 %v714_v31, %v2505_v51 }
 0x15e   : > { %v783_v35 = vmul.f32 %v2521_v13, %v756_v8  ;;  %v968_v28 = vsel %vm393_vm4, %v965_v26, %v967_v32  ;;  %v904_v55 = vsel %vm328_vm0, %v901_v5, %v903_v44 }
 0x15f   : > { %v1836_v23 = vpack.c.bf16 %v968_v28, %v966_v37 }
 0x160   : > { %v800_v40 = vadd.f32 %v2525_v27, %v783_v35 }
 0x161   : > { %1837 = vmatmul.msk.bf16.gmra.mxu1 %vm2444_vm6, %v1836_v23 }
 0x162   : > { %v816_v43 = vmax.f32 %v800_v40, 0.0 }
 0x163   : > { %v758_v45 = vpop.f32.mrf.mxu2 }
 0x164   : > { %v759_v50 = vadd.f32 %v758_v45, %v710_v25  ;;  %v1029_v20 = vpack.c.bf16 %v816_v43, %v815_v12  ;;  %v905_v53 = vrot.slane %v816_v43, 7  ;;  %v969_v41 = vrot.slane %v816_v43, 1  ;;  %v716_v12 = vpop.f32.mrf.mxu3 }
 0x165   : > { %v717_v51 = vadd.f32 %v716_v12, %v2510_v54 }
 0x166   : > { %v784_v52 = vmul.f32 %v2521_v13, %v759_v50  ;;  %1261 = vmatmul.bf16.gmra.mxu0 %v1029_v20  ;;  %v906_v56 = vsel %vm328_vm0, %v903_v44, %v905_v53  ;;  %v970_v57 = vsel %vm393_vm4, %v967_v32, %v969_v41 }
 0x167   : > { %v1808_v59 = vpack.c.bf16 %v906_v56, %v904_v55 }
 0x168   : > { %v801_v60 = vadd.f32 %v2525_v27, %v784_v52 }
 0x169   : > { %1809 = vmatmul.msk.bf16.gmra.mxu3 %vm2365_vm3, %v1808_v59 }
 0x16a   : > { %v817_v10 = vmax.f32 %v801_v60, 0.0 }
 0x16b   : > { %v760_v63 = vpop.f32.mrf.mxu2 }
 0x16c   : > { %v761_v2 = vadd.f32 %v760_v63, %v712_v61  ;;  %v971_v7 = vrot.slane %v817_v10, 1  ;;  %v907_v17 = vrot.slane %v817_v10, 7  ;;  %v719_v20 = vpop.f32.mrf.mxu3 }
 0x16d   : > { %v720_v54 = vadd.f32 %v719_v20, %v2514_v62 }
 0x16e   : > { %v785_v5 = vmul.f32 %v2521_v13, %v761_v2  ;;  %v972_v58 = vsel %vm393_vm4, %v969_v41, %v971_v7  ;;  %v908_v18 = vsel %vm328_vm0, %v905_v53, %v907_v17 }
 0x16f   : > { %v1840_v22 = vpack.c.bf16 %v972_v58, %v970_v57 }
 0x170   : > { %v802_v24 = vadd.f32 %v2525_v27, %v785_v5 }
 0x171   : > { %1841 = vmatmul.msk.bf16.gmra.mxu1 %vm2444_vm6, %v1840_v22 }
 0x172   : > { %v818_v42 = vmax.f32 %v802_v24, 0.0 }
 0x173   : > { %v763_v26 = vpop.f32.mrf.mxu2 }
 0x174   : > { %v764_v29 = vadd.f32 %v763_v26, %v715_v9  ;;  %v1032_v8 = vpack.c.bf16 %v818_v42, %v817_v10  ;;  %v909_v32 = vrot.slane %v818_v42, 7  ;;  %v973_v35 = vrot.slane %v818_v42, 1 }
 0x176   : > { %v786_v37 = vmul.f32 %v2521_v13, %v764_v29  ;;  %1266 = vmatmul.bf16.gmra.mxu0 %v1032_v8  ;;  %v910_v28 = vsel %vm328_vm0, %v907_v17, %v909_v32  ;;  %v974_v36 = vsel %vm393_vm4, %v971_v7, %v973_v35  ;;  %v721_v17 = vpop.f32.mrf.mxu3 }
 0x177   : > { %v1812_v23 = vpack.c.bf16 %v910_v28, %v908_v18  ;;  %v722_v62 = vadd.f32 %v721_v17, %v2516_v6 }
 0x178   : > { %v803_v40 = vadd.f32 %v2525_v27, %v786_v37 }
 0x179   : > { %1813 = vmatmul.msk.bf16.gmra.mxu3 %vm2365_vm3, %v1812_v23 }
 0x17a   : > { %v819_v25 = vmax.f32 %v803_v40, 0.0 }
 0x17b   : > { %v765_v43 = vpop.f32.mrf.mxu2 }
 0x17c   : > { %v766_v44 = vadd.f32 %v765_v43, %v717_v51  ;;  %v975_v45 = vrot.slane %v819_v25, 1  ;;  %v911_v50 = vrot.slane %v819_v25, 7 }
 0x17e   : > { %v787_v53 = vmul.f32 %v2521_v13, %v766_v44  ;;  %v976_v41 = vsel %vm393_vm4, %v973_v35, %v975_v45  ;;  %v912_v52 = vsel %vm328_vm0, %v909_v32, %v911_v50 }
 0x17f   : > { %v1844_v55 = vpack.c.bf16 %v976_v41, %v974_v36 }
 0x180   : > { %v804_v56 = vadd.f32 %v2525_v27, %v787_v53  ;;  %v2634_v53 = vperm.slane %v2518_v11, 3 }
 0x181   : > { %1845 = vmatmul.msk.bf16.gmra.mxu1 %vm2444_vm6, %v1844_v55 }
 0x182   : > { %v820_v57 = vmax.f32 %v804_v56, 0.0 }
 0x183   : > { %v768_v59 = vpop.f32.mrf.mxu2 }
 0x184   : > { %v769_v60 = vadd.f32 %v768_v59, %v720_v54  ;;  %v1035_v31 = vpack.c.bf16 %v820_v57, %v819_v25  ;;  %v913_v61 = vrot.slane %v820_v57, 7  ;;  %v977_v10 = vrot.slane %v820_v57, 1 }
 0x186   : > { %v788_v63 = vmul.f32 %v2521_v13, %v769_v60  ;;  %1271 = vmatmul.bf16.gmra.mxu0 %v1035_v31  ;;  %v914_v2 = vsel %vm328_vm0, %v911_v50, %v913_v61  ;;  %v978_v7 = vsel %vm393_vm4, %v975_v45, %v977_v10  ;;  %v2631_v45 = vperm.slane %v2518_v11, 2 }
 0x187   : > { %v1816_v5 = vpack.c.bf16 %v914_v2, %v912_v52 }
 0x188   : > { %v805_v58 = vadd.f32 %v2525_v27, %v788_v63 }
 0x189   : > { %1817 = vmatmul.msk.bf16.gmra.mxu3 %vm2365_vm3, %v1816_v5 }
 0x18a   : > { %v821_v18 = vmax.f32 %v805_v58, 0.0 }
 0x18b   : > { %v770_v22 = vpop.f32.mrf.mxu2 }
 0x18c   : > { %v771_v24 = vadd.f32 %v770_v22, %v722_v62  ;;  %v979_v9 = vrot.slane %v821_v18, 1  ;;  %v915_v42 = vrot.slane %v821_v18, 7 }
 0x18e   : > { %v789_v12 = vmul.f32 %v2521_v13, %v771_v24  ;;  %v980_v26 = vsel %vm393_vm4, %v977_v10, %v979_v9  ;;  %v916_v29 = vsel %vm328_vm0, %v913_v61, %v915_v42 }
 0x18f   : > { %v1848_v8 = vpack.c.bf16 %v980_v26, %v978_v7 }
 0x190   : > { %v806_v32 = vadd.f32 %v2525_v27, %v789_v12 }
 0x191   : > { %1849 = vmatmul.msk.bf16.gmra.mxu1 %vm2444_vm6, %v1848_v8 }
 0x192   : > { %v822_v35 = vmax.f32 %v806_v32, 0.0 }
 0x194   : > { %v1038_v37 = vpack.c.bf16 %v822_v35, %v821_v18  ;;  %v917_v6 = vrot.slane %v822_v35, 7  ;;  %v981_v28 = vrot.slane %v822_v35, 1 }
 0x196   : > { %1276 = vmatmul.bf16.gmra.mxu0 %v1038_v37  ;;  %v918_v36 = vsel %vm328_vm0, %v915_v42, %v917_v6  ;;  %v982_v13 = vsel %vm393_vm4, %v979_v9, %v981_v28  ;;  %v999_v23 = vsel %vm393_vm4, %v981_v28, 0.0 }
 0x197   : > { %v1820_v40 = vpack.c.bf16 %v918_v36, %v916_v29  ;;  %v1852_v51 = vpack.c.bf16 %v999_v23, %v982_v13 }
 0x199   : > { %1821 = vmatmul.msk.bf16.gmra.mxu3 %vm2365_vm3, %v1820_v40 }
 0x1a1   : > { %1853 = vmatmul.msk.bf16.gmra.mxu1 %vm2444_vm6, %v1852_v51 }
 0x1a3   : > { %v1242_v27 = vpop.f32.mrf.mxu0 }
 0x1ab   : > { %v1244_v25 = vpop.f32.mrf.mxu0 }
 0x1ac   : > { %v1193_v43 = vpop.f32.mrf.mxu3 }
 0x1ad   : > { %v1243_v44 = vadd.f32 %v1242_v27, %v1193_v43 }
 0x1ae   : > { %v1291_v50 = vpop.f32.mrf.mxu1 }
 0x1af   : > { %v1292_v20 = vadd.f32 %v1291_v50, %v1243_v44 }
 0x1b1   : > { %v1332_v41 = vmul.f32 %v2631_v45, %v1292_v20 }
 0x1b3   : > { %v1349_v30 = vadd.f32 %v2634_v53, %v1332_v41  ;;  %v1247_v52 = vpop.f32.mrf.mxu0 }
 0x1b4   : > { %v1195_v38 = vpop.f32.mrf.mxu3 }
 0x1b5   : > { %v1365_v55 = vadd.f32 %v2388_v48, %v1349_v30  ;;  %v1245_v56 = vadd.f32 %v1244_v25, %v1195_v38 }
 0x1b6   : > { %v1293_v54 = vpop.f32.mrf.mxu1 }
 0x1b7   : > { %v1381_v57 = vmax.f32 %v1365_v55, 0.0  ;;  %v1294_v59 = vadd.f32 %v1293_v54, %v1245_v56 }
 0x1b9   : > { %1397 = vst [vmem:[%s2640_s23] sm:$0xff] %v1381_v57  ;;  %v1333_v11 = vmul.f32 %v2631_v45, %v1294_v59 }
 0x1bb   : > { %v1350_v60 = vadd.f32 %v2634_v53, %v1333_v11  ;;  %v1249_v31 = vpop.f32.mrf.mxu0 }
 0x1bc   : > { %v1198_v61 = vpop.f32.mrf.mxu3 }
 0x1bd   : > { %v1366_v10 = vadd.f32 %v2390_v49, %v1350_v60  ;;  %v1248_v63 = vadd.f32 %v1247_v52, %v1198_v61 }
 0x1be   : > { %v1296_v48 = vpop.f32.mrf.mxu1 }
 0x1bf   : > { %v1382_v2 = vmax.f32 %v1366_v10, 0.0  ;;  %v1297_v7 = vadd.f32 %v1296_v48, %v1248_v63 }
 0x1c1   : > { %1398 = vst [vmem:[%s2640_s23 + $0x8] sm:$0xff] %v1382_v2  ;;  %v1334_v17 = vmul.f32 %v2631_v45, %v1297_v7 }
 0x1c3   : > { %v1351_v5 = vadd.f32 %v2634_v53, %v1334_v17  ;;  %v1252_v58 = vpop.f32.mrf.mxu0 }
 0x1c4   : > { %v1200_v62 = vpop.f32.mrf.mxu3 }
 0x1c5   : > { %v1367_v18 = vadd.f32 %v2404_v0, %v1351_v5  ;;  %v1250_v22 = vadd.f32 %v1249_v31, %v1200_v62 }
 0x1c6   : > { %v1298_v24 = vpop.f32.mrf.mxu1 }
 0x1c7   : > { %v1383_v9 = vmax.f32 %v1367_v18, 0.0  ;;  %v1299_v42 = vadd.f32 %v1298_v24, %v1250_v22 }
 0x1c9   : > { %1399 = vst [vmem:[%s2640_s23 + $0x10] sm:$0xff] %v1383_v9  ;;  %v1335_v49 = vmul.f32 %v2631_v45, %v1299_v42 }
 0x1cb   : > { %v1352_v12 = vadd.f32 %v2634_v53, %v1335_v49  ;;  %v1254_v26 = vpop.f32.mrf.mxu0 }
 0x1cc   : > { %v1203_v29 = vpop.f32.mrf.mxu3 }
 0x1cd   : > { %v1368_v8 = vadd.f32 %v2408_v1, %v1352_v12  ;;  %v1253_v32 = vadd.f32 %v1252_v58, %v1203_v29 }
 0x1ce   : > { %v1301_v35 = vpop.f32.mrf.mxu1 }
 0x1cf   : > { %v1384_v37 = vmax.f32 %v1368_v8, 0.0  ;;  %v1302_v6 = vadd.f32 %v1301_v35, %v1253_v32 }
 0x1d1   : > { %1400 = vst [vmem:[%s2640_s23 + $0x18] sm:$0xff] %v1384_v37  ;;  %v1336_v0 = vmul.f32 %v2631_v45, %v1302_v6 }
 0x1d3   : > { %v1353_v28 = vadd.f32 %v2634_v53, %v1336_v0  ;;  %v1257_v36 = vpop.f32.mrf.mxu0 }
 0x1d4   : > { %v1205_v13 = vpop.f32.mrf.mxu3 }
 0x1d5   : > { %v1369_v23 = vadd.f32 %v2425_v19, %v1353_v28  ;;  %v1255_v40 = vadd.f32 %v1254_v26, %v1205_v13 }
 0x1d6   : > { %v1303_v51 = vpop.f32.mrf.mxu1 }
 0x1d7   : > { %v1385_v27 = vmax.f32 %v1369_v23, 0.0  ;;  %v1304_v25 = vadd.f32 %v1303_v51, %v1255_v40 }
 0x1d9   : > { %1401 = vst [vmem:[%s2640_s23 + $0x20] sm:$0xff] %v1385_v27  ;;  %v1337_v1 = vmul.f32 %v2631_v45, %v1304_v25 }
 0x1db   : > { %v1354_v43 = vadd.f32 %v2634_v53, %v1337_v1  ;;  %v1259_v44 = vpop.f32.mrf.mxu0 }
 0x1dc   : > { %v1208_v50 = vpop.f32.mrf.mxu3 }
 0x1dd   : > { %v1370_v20 = vadd.f32 %v2429_v21, %v1354_v43  ;;  %v1258_v41 = vadd.f32 %v1257_v36, %v1208_v50 }
 0x1de   : > { %v1306_v30 = vpop.f32.mrf.mxu1 }
 0x1df   : > { %v1386_v52 = vmax.f32 %v1370_v20, 0.0  ;;  %v1307_v38 = vadd.f32 %v1306_v30, %v1258_v41 }
 0x1e1   : > { %1402 = vst [vmem:[%s2640_s23 + $0x28] sm:$0xff] %v1386_v52  ;;  %v1338_v19 = vmul.f32 %v2631_v45, %v1307_v38 }
 0x1e3   : > { %v1355_v55 = vadd.f32 %v2634_v53, %v1338_v19  ;;  %v1262_v56 = vpop.f32.mrf.mxu0 }
 0x1e4   : > { %v1210_v54 = vpop.f32.mrf.mxu3 }
 0x1e5   : > { %v1371_v57 = vadd.f32 %v2449_v39, %v1355_v55  ;;  %v1260_v59 = vadd.f32 %v1259_v44, %v1210_v54 }
 0x1e6   : > { %v1308_v11 = vpop.f32.mrf.mxu1 }
 0x1e7   : > { %v1387_v60 = vmax.f32 %v1371_v57, 0.0  ;;  %v1309_v31 = vadd.f32 %v1308_v11, %v1260_v59 }
 0x1e9   : > { %1403 = vst [vmem:[%s2640_s23 + $0x30] sm:$0xff] %v1387_v60  ;;  %v1339_v21 = vmul.f32 %v2631_v45, %v1309_v31 }
 0x1eb   : > { %v1356_v61 = vadd.f32 %v2634_v53, %v1339_v21  ;;  %v1264_v10 = vpop.f32.mrf.mxu0 }
 0x1ec   : > { %v1213_v63 = vpop.f32.mrf.mxu3 }
 0x1ed   : > { %v1372_v48 = vadd.f32 %v2348_v14, %v1356_v61  ;;  %v1263_v2 = vadd.f32 %v1262_v56, %v1213_v63 }
 0x1ee   : > { %v1311_v7 = vpop.f32.mrf.mxu1 }
 0x1ef   : > { %v1388_v17 = vmax.f32 %v1372_v48, 0.0  ;;  %v1312_v5 = vadd.f32 %v1311_v7, %v1263_v2 }
 0x1f1   : > { %1404 = vst [vmem:[%s2640_s23 + $0x38] sm:$0xff] %v1388_v17  ;;  %v1340_v39 = vmul.f32 %v2631_v45, %v1312_v5 }
 0x1f3   : > { %v1357_v58 = vadd.f32 %v2634_v53, %v1340_v39  ;;  %v1267_v62 = vpop.f32.mrf.mxu0 }
 0x1f4   : > { %v1215_v18 = vpop.f32.mrf.mxu3 }
 0x1f5   : > { %v1373_v22 = vadd.f32 %v2350_v15, %v1357_v58  ;;  %v1265_v24 = vadd.f32 %v1264_v10, %v1215_v18 }
 0x1f6   : > { %v1313_v9 = vpop.f32.mrf.mxu1 }
 0x1f7   : > { %v1389_v42 = vmax.f32 %v1373_v22, 0.0  ;;  %v1314_v49 = vadd.f32 %v1313_v9, %v1265_v24 }
 0x1f9   : > { %1405 = vst [vmem:[%s2640_s23 + $0x40] sm:$0xff] %v1389_v42  ;;  %v1341_v14 = vmul.f32 %v2631_v45, %v1314_v49 }
 0x1fb   : > { %v1358_v12 = vadd.f32 %v2634_v53, %v1341_v14  ;;  %v1269_v26 = vpop.f32.mrf.mxu0 }
 0x1fc   : > { %v1218_v29 = vpop.f32.mrf.mxu3 }
 0x1fd   : > { %v1374_v8 = vadd.f32 %v2352_v16, %v1358_v12  ;;  %v1268_v32 = vadd.f32 %v1267_v62, %v1218_v29 }
 0x1fe   : > { %v1316_v35 = vpop.f32.mrf.mxu1 }
 0x1ff   : > { %v1390_v37 = vmax.f32 %v1374_v8, 0.0  ;;  %v1317_v6 = vadd.f32 %v1316_v35, %v1268_v32 }
 0x201   : > { %1406 = vst [vmem:[%s2640_s23 + $0x48] sm:$0xff] %v1390_v37  ;;  %v1342_v15 = vmul.f32 %v2631_v45, %v1317_v6 }
 0x203   : > { %v1359_v0 = vadd.f32 %v2634_v53, %v1342_v15  ;;  %v1272_v23 = vpop.f32.mrf.mxu0 }
 0x204   : > { %v1220_v28 = vpop.f32.mrf.mxu3 }
 0x205   : > { %v1375_v36 = vadd.f32 %v2372_v33, %v1359_v0  ;;  %v1270_v13 = vadd.f32 %v1269_v26, %v1220_v28 }
 0x206   : > { %v1318_v40 = vpop.f32.mrf.mxu1 }
 0x207   : > { %v1391_v51 = vmax.f32 %v1375_v36, 0.0  ;;  %v1319_v27 = vadd.f32 %v1318_v40, %v1270_v13 }
 0x209   : > { %1407 = vst [vmem:[%s2640_s23 + $0x50] sm:$0xff] %v1391_v51  ;;  %v1343_v16 = vmul.f32 %v2631_v45, %v1319_v27 }
 0x20b   : > { %v1360_v25 = vadd.f32 %v2634_v53, %v1343_v16  ;;  %v1274_v33 = vpop.f32.mrf.mxu0 }
 0x20c   : > { %v1223_v1 = vpop.f32.mrf.mxu3 }
 0x20d   : > { %v1376_v43 = vadd.f32 %v2374_v34, %v1360_v25  ;;  %v1273_v44 = vadd.f32 %v1272_v23, %v1223_v1 }
 0x20e   : > { %v1321_v50 = vpop.f32.mrf.mxu1 }
 0x20f   : > { %v1392_v20 = vmax.f32 %v1376_v43, 0.0  ;;  %v1322_v41 = vadd.f32 %v1321_v50, %v1273_v44 }
 0x211   : > { %1408 = vst [vmem:[%s2640_s23 + $0x58] sm:$0xff] %v1392_v20  ;;  %v1344_v30 = vmul.f32 %v2631_v45, %v1322_v41 }
 0x213   : > { %v1361_v52 = vadd.f32 %v2634_v53, %v1344_v30  ;;  %v1277_v59 = vpop.f32.mrf.mxu0 }
 0x214   : > { %v1225_v38 = vpop.f32.mrf.mxu3 }
 0x215   : > { %v1377_v19 = vadd.f32 %v2384_v46, %v1361_v52  ;;  %v1275_v55 = vadd.f32 %v1274_v33, %v1225_v38 }
 0x216   : > { %v1323_v56 = vpop.f32.mrf.mxu1 }
 0x217   : > { %v1393_v54 = vmax.f32 %v1377_v19, 0.0  ;;  %v1324_v57 = vadd.f32 %v1323_v56, %v1275_v55 }
 0x219   : > { %1409 = vst [vmem:[%s2640_s23 + $0x60] sm:$0xff] %v1393_v54  ;;  %v1345_v34 = vmul.f32 %v2631_v45, %v1324_v57 }
 0x21b   : > { %v1362_v11 = vadd.f32 %v2634_v53, %v1345_v34  ;;  %v1279_v2 = vpop.f32.mrf.mxu0 }
 0x21c   : > { %v1228_v60 = vpop.f32.mrf.mxu3 }
 0x21d   : > { %v1378_v31 = vadd.f32 %v2386_v47, %v1362_v11  ;;  %v1278_v21 = vadd.f32 %v1277_v59, %v1228_v60 }
 0x21e   : > { %v1326_v61 = vpop.f32.mrf.mxu1 }
 0x21f   : > { %v1394_v10 = vmax.f32 %v1378_v31, 0.0  ;;  %v1327_v63 = vadd.f32 %v1326_v61, %v1278_v21 }
 0x221   : > { %1410 = vst [vmem:[%s2640_s23 + $0x68] sm:$0xff] %v1394_v10  ;;  %v1346_v46 = vmul.f32 %v2631_v45, %v1327_v63 }
 0x223   : > { %v1363_v48 = vadd.f32 %v2634_v53, %v1346_v46 }
 0x224   : > { %v1230_v7 = vpop.f32.mrf.mxu3 }
 0x225   : > { %v1379_v17 = vadd.f32 %v2411_v3, %v1363_v48  ;;  %v1280_v5 = vadd.f32 %v1279_v2, %v1230_v7 }
 0x226   : > { %v1328_v47 = vpop.f32.mrf.mxu1 }
 0x227   : > { %v1395_v39 = vmax.f32 %v1379_v17, 0.0  ;;  %v1329_v58 = vadd.f32 %v1328_v47, %v1280_v5 }
 0x229   : > { %1411 = vst [vmem:[%s2640_s23 + $0x70] sm:$0xff] %v1395_v39  ;;  %v1347_v62 = vmul.f32 %v2631_v45, %v1329_v58 }
 0x22b   : > { %v1364_v18 = vadd.f32 %v2634_v53, %v1347_v62 }
 0x22d   : > { %v1380_v3 = vadd.f32 %v2413_v4, %v1364_v18 }
 0x22f   : > { %v1396_v22 = vmax.f32 %v1380_v3, 0.0 }
 0x231   : > { %1412 = vst [vmem:[%s2640_s23 + $0x78] sm:$0xff] %v1396_v22 }
 0x232   : > { %2155 = shalt.err (!%p2152_p10)
}
 0x233   : > { %s2205_s11 = smov 128   ;;  %s2206_s25 = smov 8  }
 0x234   : > { %1976 = dma.vmem_to_hbm [thread:$0]  (%p2296_p3), %s1427_s28, 2048, %s1429_s4, %s1414_s16, %s2205_s11, %s2205_s11, %s2206_s25  }
 0x235 PF: > { %s1443_s5 = sand.u32 1, %s2186_s12   ;;  %p2750_p12 = scmp.ge.s32.totalorder %s2198_s15, 2 }
 0x236   : > { %s1444_s18 = scalar_lea.sflag [#allocation4], %s1443_s5 }
 0x237   : > { %p1990_p13 = pnand %p2750_p12, %p2262_p6 }
 0x239   : > { %p1991_p0 = pneg %p1990_p13 }
 0x23b   : > { %2181 = dma.done.wait (%p1991_p0), %s1444_s18, 2048  }
 0x23c   : > { %2183 = vsyncadd (%p1991_p0), %s1444_s18, 4294965248  ;;  %p17_p5 = scmp.ge.s32.totalorder %s2286_s6, 4   ;;  %s2751_s12 = smov %s2190_s13 }
 0x23d   : > { %s2752_s13 = smov %s2194_s14  ;;  %s2753_s14 = smov %s2302_s10 }
 0x23e   : > { %s2754_s15 = smov %s2286_s6  ;;  %19 = sbr.rel (!%p17_p5) target bundleno = 6 (0x6), region = 86 }
 0x243   :  { %1450 = vsyncpa [#allocation3], 1 }
 0x244   :  { %1452 = vsyncpa [#allocation3 + $0x1], 1 }
 0x245   :  { %1453 = vsyncpa [#allocation6], 1 }
 0x246   :  { %1454 = vsyncpa [#allocation4], 1 }
 0x247   :  { %1456 = vsyncpa [#allocation4 + $0x1], 1 }

</bundles_post_ra>
